<compile_context>
chip_gen: v7x
topology: tpu7x:2x2x1
jax: 0.10.0
libtpu: 0.0.40
codegen_flags: <defaults>
</compile_context>

<pallas_src>
import functools

import jax
import jax.numpy as jnp
from jax import lax
from jax.experimental import pallas as pl
from jax.experimental.pallas import tpu as pltpu


# ----------------------------- kernel helpers -------------------------------


def _conv3x3_bn(xf_b, m_left, m_right, w2_ref, b2_ref, *, cmid, width):
    """3x3 conv (stride 1, pad 1) + folded BN2 on a bf16 (Cmid, H*W) feature.

    Nine accumulated (Cout, Cmid) @ (Cmid, HW) MXU matmuls, one per tap.  Taps
    that fall outside the image in the H direction land in the zero side-pads;
    taps that would wrap across a row in the W direction are killed by the
    precomputed column masks (bf16 selects).  Accumulation is f32; BN2 scale
    is pre-folded into w2, only the bias add remains here.
    """
    hw = xf_b.shape[1]
    zpad = jnp.zeros((cmid, width + 1), jnp.bfloat16)
    xpad = jnp.concatenate([zpad, xf_b, zpad], axis=1)     # (Cmid, HW + 2W + 2)

    acc = None
    for t in range(9):
        dh, dw = t // 3, t % 3
        start = (width + 1) + (dh - 1) * width + (dw - 1)
        tap = xpad[:, start:start + hw]                    # (Cmid, HW) bf16
        if dw == 0:
            tap = jnp.where(m_left, tap, 0.0)
        elif dw == 2:
            tap = jnp.where(m_right, tap, 0.0)
        w2t = w2_ref[:, t * cmid:(t + 1) * cmid]           # (Cout, Cmid) bf16
        part = jnp.dot(w2t, tap, preferred_element_type=jnp.float32)
        acc = part if acc is None else acc + part
    return acc + b2_ref[...]                               # (Cout, HW) f32


def _edge_masks(mask_ref, cmid, hw):
    masks = mask_ref[...]                                  # (2, HW) f32
    m_left = jnp.broadcast_to(masks[0:1, :], (cmid, hw)) > 0.5
    m_right = jnp.broadcast_to(masks[1:2, :], (cmid, hw)) > 0.5
    return m_left, m_right


def _abf_fuse_kernel(x_ref, y_ref, g_ref, wcat_ref, wabot_ref, b1_ref,
                     batt_ref, w2_ref, b2_ref, mask_ref, out_ref, xf_ref,
                     *, cmid, width):
    x = x_ref[0]                                           # (Cin,  HW)  bf16
    ysm = y_ref[0]                                         # (Cmid, hyw) bf16
    hw = x.shape[1]
    m_left, m_right = _edge_masks(mask_ref, cmid, hw)

    # In-VMEM nearest-neighbour upsample of y via an exact 0/1 selection matmul.
    y_up = jnp.dot(ysm, g_ref[...], preferred_element_type=jnp.float32)
    yb = y_up.astype(jnp.bfloat16)                         # lossless (selection)

    # conv1(1x1)+BN1 and the x-half of the attention logits in one matmul:
    # wcat = [ (w1*s1).T ; ((w1*s1)@wa_x).T ]  -> rows [0:cmid) give x1,
    # rows [cmid:cmid+2) give the x contribution to the attention logits.
    xz = jnp.dot(wcat_ref[...], x, preferred_element_type=jnp.float32)
    x1 = xz[:cmid, :] + b1_ref[...]                        # (Cmid, HW)
    za = (xz[cmid:cmid + 2, :]
          + jnp.dot(wabot_ref[...], yb, preferred_element_type=jnp.float32)
          + batt_ref[...])                                 # (2, HW)
    z = jax.nn.sigmoid(za)

    xf = x1 * z[0:1, :] + y_up * z[1:2, :]                 # fused feature (f32)
    xf_b = xf.astype(jnp.bfloat16)
    xf_ref[...] = xf_b[None]

    out = _conv3x3_bn(xf_b, m_left, m_right, w2_ref, b2_ref,
                      cmid=cmid, width=width)
    out_ref[...] = out.astype(jnp.bfloat16)[None]


def _abf_nofuse_kernel(x_ref, w1_ref, b1_ref, w2_ref, b2_ref, mask_ref,
                       out_ref, xf_ref, *, cmid, width):
    x = x_ref[0]                                           # (Cin, HW) bf16
    hw = x.shape[1]
    m_left, m_right = _edge_masks(mask_ref, cmid, hw)

    xf = (jnp.dot(w1_ref[...], x, preferred_element_type=jnp.float32)
          + b1_ref[...])                                   # conv1(1x1)+BN1
    xf_b = xf.astype(jnp.bfloat16)
    xf_ref[...] = xf_b[None]

    out = _conv3x3_bn(xf_b, m_left, m_right, w2_ref, b2_ref,
                      cmid=cmid, width=width)
    out_ref[...] = out.astype(jnp.bfloat16)[None]


# ----------------------------- wrapper ---------------------------------------


def _fold_bn(gamma, beta, mean, var, eps=1e-5):
    scale = gamma / jnp.sqrt(var + eps)
    return scale, beta - mean * scale


def _vmem_limit_bytes(in_nbytes, out_nbytes, scratch_nbytes):
    # BlockSpec double-buffers every input and output block.
    est = 2 * (sum(in_nbytes) + sum(out_nbytes)) + scratch_nbytes
    return int(max(8 << 20, min(2 * est, 64 << 20)))


def abf_forward(x_nchw, y_nchw, params, fuse=True):
    n, cin, h, w = x_nchw.shape
    cmid = params["w1"].shape[1]
    cout = params["w2"].shape[-1]
    hw = h * w

    s1, b1 = _fold_bn(params["bn1_gamma"], params["bn1_beta"],
                      params["bn1_mean"], params["bn1_var"])
    s2, b2 = _fold_bn(params["bn2_gamma"], params["bn2_beta"],
                      params["bn2_mean"], params["bn2_var"])

    # Fold BN1 scale into conv1 weight and BN2 scale into conv2 weight.
    w1s = params["w1"] * s1[None, :]                             # (Cin, Cmid)
    w2mat = params["w2"].reshape(9 * cmid, cout).T * s2[:, None]  # (Cout, 9*Cmid)

    x_chw = x_nchw.reshape(n, cin, hw).astype(jnp.bfloat16)
    col = jnp.arange(hw, dtype=jnp.int32) % w
    masks = jnp.stack([(col >= 1), (col <= w - 2)]).astype(jnp.float32)  # (2,HW)

    b1col = b1[:, None].astype(jnp.float32)
    b2col = b2[:, None].astype(jnp.float32)
    w2_bf = w2mat.astype(jnp.bfloat16)

    out_shapes = (jax.ShapeDtypeStruct((n, cout, hw), jnp.bfloat16),
                  jax.ShapeDtypeStruct((n, cmid, hw), jnp.bfloat16))
    out_specs = (pl.BlockSpec((1, cout, hw), lambda i: (i, 0, 0)),
                 pl.BlockSpec((1, cmid, hw), lambda i: (i, 0, 0)))
    out_nbytes = [cout * hw * 2, cmid * hw * 2]
    # In-kernel temporaries (xz/xf/y_up/acc in f32, xpad/taps in bf16).
    scratch_est = ((4 * cmid * hw + 2 * cout * hw) * 4
                   + (cmid * (hw + 2 * w + 2) + 3 * cmid * hw) * 2)

    if fuse:
        hy, wy = y_nchw.shape[2], y_nchw.shape[3]
        hyw = hy * wy
        # F.interpolate(mode='nearest'): src_idx = floor(dst_idx * in / out).
        # Build an exact 0/1 selection matrix so the upsample happens in-VMEM.
        hi = (jnp.arange(h) * hy) // h
        wi = (jnp.arange(w) * wy) // w
        src = (hi[:, None] * wy + wi[None, :]).reshape(hw)          # (HW,)
        g = (jnp.arange(hyw, dtype=jnp.int32)[:, None]
             == src[None, :]).astype(jnp.bfloat16)                  # (hyw, HW)

        y_chw = y_nchw.reshape(n, cmid, hyw).astype(jnp.bfloat16)

        wa_top = params["att_w"][:cmid, :]                 # (Cmid, 2)
        wa_bot = params["att_w"][cmid:, :]                 # (Cmid, 2)
        # Precompute the x-branch attention projection so both attention
        # matmuls are independent of the conv1 result.
        wcat = jnp.concatenate([w1s.T, (w1s @ wa_top).T], axis=0)   # (Cmid+2,Cin)
        battcol = (b1 @ wa_top + params["att_b"])[:, None].astype(jnp.float32)

        in_nbytes = [cin * hw * 2, cmid * hyw * 2, hyw * hw * 2,
                     (cmid + 2) * cin * 2, 2 * cmid * 2, cmid * 4, 2 * 4,
                     cout * 9 * cmid * 2, cout * 4, 2 * hw * 4]
        cparams = pltpu.CompilerParams(
            dimension_semantics=("parallel",),
            vmem_limit_bytes=_vmem_limit_bytes(in_nbytes, out_nbytes,
                                               scratch_est))

        out, xf = pl.pallas_call(
            functools.partial(_abf_fuse_kernel, cmid=cmid, width=w),
            out_shape=out_shapes,
            grid=(n,),
            in_specs=[
                pl.BlockSpec((1, cin, hw), lambda i: (i, 0, 0)),
                pl.BlockSpec((1, cmid, hyw), lambda i: (i, 0, 0)),
                pl.BlockSpec((hyw, hw), lambda i: (0, 0)),
                pl.BlockSpec((cmid + 2, cin), lambda i: (0, 0)),
                pl.BlockSpec((2, cmid), lambda i: (0, 0)),
                pl.BlockSpec((cmid, 1), lambda i: (0, 0)),
                pl.BlockSpec((2, 1), lambda i: (0, 0)),
                pl.BlockSpec((cout, 9 * cmid), lambda i: (0, 0)),
                pl.BlockSpec((cout, 1), lambda i: (0, 0)),
                pl.BlockSpec((2, hw), lambda i: (0, 0)),
            ],
            out_specs=out_specs,
            compiler_params=cparams,
        )(x_chw, y_chw, g, wcat.astype(jnp.bfloat16),
          wa_bot.T.astype(jnp.bfloat16), b1col, battcol,
          w2_bf, b2col, masks)
    else:
        in_nbytes = [cin * hw * 2, cmid * cin * 2, cmid * 4,
                     cout * 9 * cmid * 2, cout * 4, 2 * hw * 4]
        cparams = pltpu.CompilerParams(
            dimension_semantics=("parallel",),
            vmem_limit_bytes=_vmem_limit_bytes(in_nbytes, out_nbytes,
                                               scratch_est))

        out, xf = pl.pallas_call(
            functools.partial(_abf_nofuse_kernel, cmid=cmid, width=w),
            out_shape=out_shapes,
            grid=(n,),
            in_specs=[
                pl.BlockSpec((1, cin, hw), lambda i: (i, 0, 0)),
                pl.BlockSpec((cmid, cin), lambda i: (0, 0)),
                pl.BlockSpec((cmid, 1), lambda i: (0, 0)),
                pl.BlockSpec((cout, 9 * cmid), lambda i: (0, 0)),
                pl.BlockSpec((cout, 1), lambda i: (0, 0)),
                pl.BlockSpec((2, hw), lambda i: (0, 0)),
            ],
            out_specs=out_specs,
            compiler_params=cparams,
        )(x_chw, w1s.T.astype(jnp.bfloat16), b1col, w2_bf, b2col, masks)

    # Free reshapes only: outputs are already in NCHW element order (bf16).
    return out.reshape(n, cout, h, w), xf.reshape(n, cmid, h, w)


# --------------------------- params & reference ------------------------------


def init_params(key, cin, cmid, cout):
    k = jax.random.split(key, 8)
    # kaiming_uniform_(a=1): bound = sqrt(3 / fan_in)
    bnd1 = (3.0 / cin) ** 0.5
    w1 = jax.random.uniform(k[0], (cin, cmid), jnp.float32, -bnd1, bnd1)
    bnd2 = (3.0 / (cmid * 9)) ** 0.5
    w2 = jax.random.uniform(k[1], (9, cmid, cout), jnp.float32, -bnd2, bnd2)
    bnda = (1.0 / (2 * cmid)) ** 0.5
    att_w = jax.random.uniform(k[2], (2 * cmid, 2), jnp.float32, -bnda, bnda)
    att_b = jax.random.uniform(k[3], (2,), jnp.float32, -bnda, bnda)
    return dict(
        w1=w1, w2=w2, att_w=att_w, att_b=att_b,
        bn1_gamma=jnp.ones((cmid,)) + 0.05 * jax.random.normal(k[4], (cmid,)),
        bn1_beta=0.05 * jax.random.normal(k[5], (cmid,)),
        bn1_mean=jnp.zeros((cmid,)), bn1_var=jnp.ones((cmid,)),
        bn2_gamma=jnp.ones((cout,)) + 0.05 * jax.random.normal(k[6], (cout,)),
        bn2_beta=0.05 * jax.random.normal(k[7], (cout,)),
        bn2_mean=jnp.zeros((cout,)), bn2_var=jnp.ones((cout,)),
    )


def reference(x_nchw, y_nchw, params, fuse=True):
    # pure-JAX NCHW reference mirroring the PyTorch module (eval-mode BN)
    cin, cmid = params["w1"].shape
    cout = params["w2"].shape[-1]
    dn = ("NCHW", "OIHW", "NCHW")
    w1 = params["w1"].T.reshape(cmid, cin, 1, 1)
    x1 = lax.conv_general_dilated(x_nchw, w1, (1, 1), "VALID",
                                  dimension_numbers=dn)
    s1, b1 = _fold_bn(params["bn1_gamma"], params["bn1_beta"],
                      params["bn1_mean"], params["bn1_var"])
    x1 = x1 * s1[None, :, None, None] + b1[None, :, None, None]
    if fuse:
        n, _, h, w = x_nchw.shape
        hy, wy = y_nchw.shape[2], y_nchw.shape[3]
        hi = (jnp.arange(h) * hy) // h
        wi = (jnp.arange(w) * wy) // w
        y = y_nchw[:, :, hi][:, :, :, wi]
        z = jnp.concatenate([x1, y], axis=1)
        wa = params["att_w"].T.reshape(2, 2 * cmid, 1, 1)
        z = lax.conv_general_dilated(z, wa, (1, 1), "VALID",
                                     dimension_numbers=dn)
        z = jax.nn.sigmoid(z + params["att_b"][None, :, None, None])
        xf = x1 * z[:, 0:1] + y * z[:, 1:2]
    else:
        xf = x1
    w2 = jnp.transpose(params["w2"].reshape(3, 3, cmid, cout), (3, 2, 0, 1))
    yo = lax.conv_general_dilated(xf, w2, (1, 1), ((1, 1), (1, 1)),
                                  dimension_numbers=dn)
    s2, b2 = _fold_bn(params["bn2_gamma"], params["bn2_beta"],
                      params["bn2_mean"], params["bn2_var"])
    yo = yo * s2[None, :, None, None] + b2[None, :, None, None]
    return yo, xf


if __name__ == "__main__":
    key = jax.random.PRNGKey(0)
    kx, ky, kp = jax.random.split(key, 3)
    N, Cin, Cmid, Cout, H, W = 2, 8, 16, 16, 16, 16

    x = jax.random.normal(kx, (N, Cin, H, W), jnp.float32)
    # y is the previous fused feature (Cmid channels) at lower resolution
    y = jax.random.normal(ky, (N, Cmid, H // 2, W // 2), jnp.float32)
    params = init_params(kp, Cin, Cmid, Cout)

    # fuse=True path
    y_out, x_out = abf_forward(x, y, params, fuse=True)
    jax.block_until_ready((y_out, x_out))
    y_ref, x_ref = reference(x, y, params, fuse=True)
    assert y_out.shape == (N, Cout, H, W) and x_out.shape == (N, Cmid, H, W)
    assert jnp.allclose(x_out.astype(jnp.float32), x_ref, atol=4e-2, rtol=4e-2)
    assert jnp.allclose(y_out.astype(jnp.float32), y_ref, atol=4e-2, rtol=4e-2)

    # fuse=False path (no attention)
    y0_out, x0_out = abf_forward(x, None, params, fuse=False)
    jax.block_until_ready((y0_out, x0_out))
    y0_ref, x0_ref = reference(x, None, params, fuse=False)
    assert jnp.allclose(x0_out.astype(jnp.float32), x0_ref, atol=4e-2, rtol=4e-2)
    assert jnp.allclose(y0_out.astype(jnp.float32), y0_ref, atol=4e-2, rtol=4e-2)

    print("KERNEL_OK")
</pallas_src>

<mosaic_0001>
module attributes {stable_mosaic.version = 11 : i64} {
  func.func @_abf_fuse_kernel(%arg0: i32, %arg1: memref<1x8x256xbf16, #tpu.memory_space<vmem>>, %arg2: memref<1x16x64xbf16, #tpu.memory_space<vmem>>, %arg3: memref<64x256xbf16, #tpu.memory_space<vmem>>, %arg4: memref<18x8xbf16, #tpu.memory_space<vmem>>, %arg5: memref<2x16xbf16, #tpu.memory_space<vmem>>, %arg6: memref<16x1xf32, #tpu.memory_space<vmem>>, %arg7: memref<2x1xf32, #tpu.memory_space<vmem>>, %arg8: memref<16x144xbf16, #tpu.memory_space<vmem>>, %arg9: memref<16x1xf32, #tpu.memory_space<vmem>>, %arg10: memref<2x256xf32, #tpu.memory_space<vmem>>, %arg11: memref<1x16x256xbf16, #tpu.memory_space<vmem>>, %arg12: memref<1x16x256xbf16, #tpu.memory_space<vmem>>) attributes {dimension_semantics = [#tpu.dimension_semantics<parallel>], iteration_bounds = array<i64: 2>, scalar_prefetch = 0 : i64, scratch_operands = 0 : i64, tpu.core_type = #tpu.core_type<tc>, window_params = [{transform_indices = @transform_0, window_bounds = array<i64: 1, 8, 256>}, {transform_indices = @transform_1, window_bounds = array<i64: 1, 16, 64>}, {pipeline_mode = #tpu.pipeline_mode<synchronous>, transform_indices = @transform_2, window_bounds = array<i64: 64, 256>}, {pipeline_mode = #tpu.pipeline_mode<synchronous>, transform_indices = @transform_3, window_bounds = array<i64: 18, 8>}, {pipeline_mode = #tpu.pipeline_mode<synchronous>, transform_indices = @transform_4, window_bounds = array<i64: 2, 16>}, {pipeline_mode = #tpu.pipeline_mode<synchronous>, transform_indices = @transform_5, window_bounds = array<i64: 16, 1>}, {pipeline_mode = #tpu.pipeline_mode<synchronous>, transform_indices = @transform_6, window_bounds = array<i64: 2, 1>}, {pipeline_mode = #tpu.pipeline_mode<synchronous>, transform_indices = @transform_7, window_bounds = array<i64: 16, 144>}, {pipeline_mode = #tpu.pipeline_mode<synchronous>, transform_indices = @transform_8, window_bounds = array<i64: 16, 1>}, {pipeline_mode = #tpu.pipeline_mode<synchronous>, transform_indices = @transform_9, window_bounds = array<i64: 2, 256>}, {transform_indices = @transform_10, window_bounds = array<i64: 1, 16, 256>}, {transform_indices = @transform_11, window_bounds = array<i64: 1, 16, 256>}]} {
    %c0 = arith.constant 0 : index
    %c0_0 = arith.constant 0 : index
    %c0_1 = arith.constant 0 : index
    %0 = vector.load %arg1[%c0, %c0_0, %c0_1] : memref<1x8x256xbf16, #tpu.memory_space<vmem>>, vector<1x8x256xbf16>
    %1 = vector.shape_cast %0 : vector<1x8x256xbf16> to vector<8x256xbf16>
    %c0_2 = arith.constant 0 : index
    %c0_3 = arith.constant 0 : index
    %c0_4 = arith.constant 0 : index
    %2 = vector.load %arg2[%c0_2, %c0_3, %c0_4] : memref<1x16x64xbf16, #tpu.memory_space<vmem>>, vector<1x16x64xbf16>
    %3 = vector.shape_cast %2 : vector<1x16x64xbf16> to vector<16x64xbf16>
    %c0_5 = arith.constant 0 : index
    %c0_6 = arith.constant 0 : index
    %4 = vector.load %arg10[%c0_5, %c0_6] : memref<2x256xf32, #tpu.memory_space<vmem>>, vector<2x256xf32>
    %5 = vector.extract_strided_slice %4 {offsets = [0, 0], sizes = [1, 256], strides = [1, 1]} : vector<2x256xf32> to vector<1x256xf32>
    %6 = vector.shape_cast %5 : vector<1x256xf32> to vector<1x256xf32>
    %7 = vector.broadcast %6 : vector<1x256xf32> to vector<16x256xf32>
    %cst = arith.constant 5.000000e-01 : f32
    %8 = vector.broadcast %cst : f32 to vector<16x256xf32>
    %9 = arith.cmpf ogt, %7, %8 : vector<16x256xf32>
    %10 = vector.extract_strided_slice %4 {offsets = [1, 0], sizes = [1, 256], strides = [1, 1]} : vector<2x256xf32> to vector<1x256xf32>
    %11 = vector.shape_cast %10 : vector<1x256xf32> to vector<1x256xf32>
    %12 = vector.broadcast %11 : vector<1x256xf32> to vector<16x256xf32>
    %cst_7 = arith.constant 5.000000e-01 : f32
    %13 = vector.broadcast %cst_7 : f32 to vector<16x256xf32>
    %14 = arith.cmpf ogt, %12, %13 : vector<16x256xf32>
    %c0_8 = arith.constant 0 : index
    %c0_9 = arith.constant 0 : index
    %15 = vector.load %arg3[%c0_8, %c0_9] : memref<64x256xbf16, #tpu.memory_space<vmem>>, vector<64x256xbf16>
    %cst_10 = arith.constant dense<0.000000e+00> : vector<16x256xf32>
    %16 = tpu.matmul %3, %15, %cst_10 {dimension_numbers = #tpu.dot_dimension_numbers<[1], [0], [0], [1], [0, 0, 1, 1], [], []>} : vector<16x64xbf16>, vector<64x256xbf16>, vector<16x256xf32> -> vector<16x256xf32>
    %17 = arith.truncf %16 : vector<16x256xf32> to vector<16x256xbf16>
    %c0_11 = arith.constant 0 : index
    %c0_12 = arith.constant 0 : index
    %18 = vector.load %arg4[%c0_11, %c0_12] : memref<18x8xbf16, #tpu.memory_space<vmem>>, vector<18x8xbf16>
    %cst_13 = arith.constant dense<0.000000e+00> : vector<18x256xf32>
    %19 = tpu.matmul %18, %1, %cst_13 {dimension_numbers = #tpu.dot_dimension_numbers<[1], [0], [0], [1], [0, 0, 1, 1], [], []>} : vector<18x8xbf16>, vector<8x256xbf16>, vector<18x256xf32> -> vector<18x256xf32>
    %20 = vector.extract_strided_slice %19 {offsets = [0, 0], sizes = [16, 256], strides = [1, 1]} : vector<18x256xf32> to vector<16x256xf32>
    %c0_14 = arith.constant 0 : index
    %c0_15 = arith.constant 0 : index
    %21 = vector.load %arg6[%c0_14, %c0_15] : memref<16x1xf32, #tpu.memory_space<vmem>>, vector<16x1xf32>
    %22 = vector.broadcast %21 : vector<16x1xf32> to vector<16x256xf32>
    %23 = arith.addf %20, %22 : vector<16x256xf32>
    %24 = vector.extract_strided_slice %19 {offsets = [16, 0], sizes = [2, 256], strides = [1, 1]} : vector<18x256xf32> to vector<2x256xf32>
    %c0_16 = arith.constant 0 : index
    %c0_17 = arith.constant 0 : index
    %25 = vector.load %arg5[%c0_16, %c0_17] : memref<2x16xbf16, #tpu.memory_space<vmem>>, vector<2x16xbf16>
    %cst_18 = arith.constant dense<0.000000e+00> : vector<2x256xf32>
    %26 = tpu.matmul %25, %17, %cst_18 {dimension_numbers = #tpu.dot_dimension_numbers<[1], [0], [0], [1], [0, 0, 1, 1], [], []>} : vector<2x16xbf16>, vector<16x256xbf16>, vector<2x256xf32> -> vector<2x256xf32>
    %27 = arith.addf %24, %26 : vector<2x256xf32>
    %c0_19 = arith.constant 0 : index
    %c0_20 = arith.constant 0 : index
    %28 = vector.load %arg7[%c0_19, %c0_20] : memref<2x1xf32, #tpu.memory_space<vmem>>, vector<2x1xf32>
    %29 = vector.broadcast %28 : vector<2x1xf32> to vector<2x256xf32>
    %30 = arith.addf %27, %29 : vector<2x256xf32>
    %31 = arith.negf %30 : vector<2x256xf32>
    %32 = math.exp %31 : vector<2x256xf32>
    %cst_21 = arith.constant 1.000000e+00 : f32
    %33 = vector.broadcast %cst_21 : f32 to vector<2x256xf32>
    %34 = arith.addf %33, %32 : vector<2x256xf32>
    %35 = arith.divf %33, %34 : vector<2x256xf32>
    %36 = vector.extract_strided_slice %35 {offsets = [0, 0], sizes = [1, 256], strides = [1, 1]} : vector<2x256xf32> to vector<1x256xf32>
    %37 = vector.broadcast %36 : vector<1x256xf32> to vector<16x256xf32>
    %38 = arith.mulf %23, %37 : vector<16x256xf32>
    %39 = vector.extract_strided_slice %35 {offsets = [1, 0], sizes = [1, 256], strides = [1, 1]} : vector<2x256xf32> to vector<1x256xf32>
    %40 = vector.broadcast %39 : vector<1x256xf32> to vector<16x256xf32>
    %41 = arith.mulf %16, %40 : vector<16x256xf32>
    %42 = arith.addf %38, %41 : vector<16x256xf32>
    %43 = arith.truncf %42 : vector<16x256xf32> to vector<16x256xbf16>
    %44 = vector.shape_cast %43 : vector<16x256xbf16> to vector<1x16x256xbf16>
    %c0_22 = arith.constant 0 : index
    %c0_23 = arith.constant 0 : index
    %c0_24 = arith.constant 0 : index
    %45 = vector.load %arg12[%c0_22, %c0_23, %c0_24] : memref<1x16x256xbf16, #tpu.memory_space<vmem>>, vector<1x16x256xbf16>
    tpu.vector_store %arg12[%c0_22, %c0_23, %c0_24], %44 {strides = array<i32>} : memref<1x16x256xbf16, #tpu.memory_space<vmem>>, vector<1x16x256xbf16>,
    %cst_25 = arith.constant 0.000000e+00 : bf16
    %46 = vector.broadcast %cst_25 : bf16 to vector<16x17xbf16>
    %47 = tpu.concatenate %46, %43, %46 in 1 : vector<16x17xbf16>, vector<16x256xbf16>, vector<16x17xbf16> -> vector<16x290xbf16>
    %48 = vector.extract_strided_slice %47 {offsets = [0, 0], sizes = [16, 256], strides = [1, 1]} : vector<16x290xbf16> to vector<16x256xbf16>
    %cst_26 = arith.constant 0.000000e+00 : f32
    %49 = arith.truncf %cst_26 : f32 to bf16
    %50 = vector.broadcast %49 : bf16 to vector<16x256xbf16>
    %51 = arith.select %9, %48, %50 : vector<16x256xi1>, vector<16x256xbf16>
    %c0_27 = arith.constant 0 : index
    %c0_28 = arith.constant 0 : index
    %52 = vector.load %arg8[%c0_27, %c0_28] : memref<16x144xbf16, #tpu.memory_space<vmem>>, vector<16x16xbf16>
    %cst_29 = arith.constant dense<0.000000e+00> : vector<16x256xf32>
    %53 = tpu.matmul %52, %51, %cst_29 {dimension_numbers = #tpu.dot_dimension_numbers<[1], [0], [0], [1], [0, 0, 1, 1], [], []>} : vector<16x16xbf16>, vector<16x256xbf16>, vector<16x256xf32> -> vector<16x256xf32>
    %54 = vector.extract_strided_slice %47 {offsets = [0, 1], sizes = [16, 256], strides = [1, 1]} : vector<16x290xbf16> to vector<16x256xbf16>
    %c0_30 = arith.constant 0 : index
    %c16 = arith.constant 16 : index
    %55 = vector.load %arg8[%c0_30, %c16] : memref<16x144xbf16, #tpu.memory_space<vmem>>, vector<16x16xbf16>
    %cst_31 = arith.constant dense<0.000000e+00> : vector<16x256xf32>
    %56 = tpu.matmul %55, %54, %cst_31 {dimension_numbers = #tpu.dot_dimension_numbers<[1], [0], [0], [1], [0, 0, 1, 1], [], []>} : vector<16x16xbf16>, vector<16x256xbf16>, vector<16x256xf32> -> vector<16x256xf32>
    %57 = arith.addf %53, %56 : vector<16x256xf32>
    %58 = vector.extract_strided_slice %47 {offsets = [0, 2], sizes = [16, 256], strides = [1, 1]} : vector<16x290xbf16> to vector<16x256xbf16>
    %cst_32 = arith.constant 0.000000e+00 : f32
    %59 = arith.truncf %cst_32 : f32 to bf16
    %60 = vector.broadcast %59 : bf16 to vector<16x256xbf16>
    %61 = arith.select %14, %58, %60 : vector<16x256xi1>, vector<16x256xbf16>
    %c0_33 = arith.constant 0 : index
    %c32 = arith.constant 32 : index
    %62 = vector.load %arg8[%c0_33, %c32] : memref<16x144xbf16, #tpu.memory_space<vmem>>, vector<16x16xbf16>
    %cst_34 = arith.constant dense<0.000000e+00> : vector<16x256xf32>
    %63 = tpu.matmul %62, %61, %cst_34 {dimension_numbers = #tpu.dot_dimension_numbers<[1], [0], [0], [1], [0, 0, 1, 1], [], []>} : vector<16x16xbf16>, vector<16x256xbf16>, vector<16x256xf32> -> vector<16x256xf32>
    %64 = arith.addf %57, %63 : vector<16x256xf32>
    %65 = vector.extract_strided_slice %47 {offsets = [0, 16], sizes = [16, 256], strides = [1, 1]} : vector<16x290xbf16> to vector<16x256xbf16>
    %cst_35 = arith.constant 0.000000e+00 : f32
    %66 = arith.truncf %cst_35 : f32 to bf16
    %67 = vector.broadcast %66 : bf16 to vector<16x256xbf16>
    %68 = arith.select %9, %65, %67 : vector<16x256xi1>, vector<16x256xbf16>
    %c0_36 = arith.constant 0 : index
    %c48 = arith.constant 48 : index
    %69 = vector.load %arg8[%c0_36, %c48] : memref<16x144xbf16, #tpu.memory_space<vmem>>, vector<16x16xbf16>
    %cst_37 = arith.constant dense<0.000000e+00> : vector<16x256xf32>
    %70 = tpu.matmul %69, %68, %cst_37 {dimension_numbers = #tpu.dot_dimension_numbers<[1], [0], [0], [1], [0, 0, 1, 1], [], []>} : vector<16x16xbf16>, vector<16x256xbf16>, vector<16x256xf32> -> vector<16x256xf32>
    %71 = arith.addf %64, %70 : vector<16x256xf32>
    %72 = vector.extract_strided_slice %47 {offsets = [0, 17], sizes = [16, 256], strides = [1, 1]} : vector<16x290xbf16> to vector<16x256xbf16>
    %c0_38 = arith.constant 0 : index
    %c64 = arith.constant 64 : index
    %73 = vector.load %arg8[%c0_38, %c64] : memref<16x144xbf16, #tpu.memory_space<vmem>>, vector<16x16xbf16>
    %cst_39 = arith.constant dense<0.000000e+00> : vector<16x256xf32>
    %74 = tpu.matmul %73, %72, %cst_39 {dimension_numbers = #tpu.dot_dimension_numbers<[1], [0], [0], [1], [0, 0, 1, 1], [], []>} : vector<16x16xbf16>, vector<16x256xbf16>, vector<16x256xf32> -> vector<16x256xf32>
    %75 = arith.addf %71, %74 : vector<16x256xf32>
    %76 = vector.extract_strided_slice %47 {offsets = [0, 18], sizes = [16, 256], strides = [1, 1]} : vector<16x290xbf16> to vector<16x256xbf16>
    %cst_40 = arith.constant 0.000000e+00 : f32
    %77 = arith.truncf %cst_40 : f32 to bf16
    %78 = vector.broadcast %77 : bf16 to vector<16x256xbf16>
    %79 = arith.select %14, %76, %78 : vector<16x256xi1>, vector<16x256xbf16>
    %c0_41 = arith.constant 0 : index
    %c80 = arith.constant 80 : index
    %80 = vector.load %arg8[%c0_41, %c80] : memref<16x144xbf16, #tpu.memory_space<vmem>>, vector<16x16xbf16>
    %cst_42 = arith.constant dense<0.000000e+00> : vector<16x256xf32>
    %81 = tpu.matmul %80, %79, %cst_42 {dimension_numbers = #tpu.dot_dimension_numbers<[1], [0], [0], [1], [0, 0, 1, 1], [], []>} : vector<16x16xbf16>, vector<16x256xbf16>, vector<16x256xf32> -> vector<16x256xf32>
    %82 = arith.addf %75, %81 : vector<16x256xf32>
    %83 = vector.extract_strided_slice %47 {offsets = [0, 32], sizes = [16, 256], strides = [1, 1]} : vector<16x290xbf16> to vector<16x256xbf16>
    %cst_43 = arith.constant 0.000000e+00 : f32
    %84 = arith.truncf %cst_43 : f32 to bf16
    %85 = vector.broadcast %84 : bf16 to vector<16x256xbf16>
    %86 = arith.select %9, %83, %85 : vector<16x256xi1>, vector<16x256xbf16>
    %c0_44 = arith.constant 0 : index
    %c96 = arith.constant 96 : index
    %87 = vector.load %arg8[%c0_44, %c96] : memref<16x144xbf16, #tpu.memory_space<vmem>>, vector<16x16xbf16>
    %cst_45 = arith.constant dense<0.000000e+00> : vector<16x256xf32>
    %88 = tpu.matmul %87, %86, %cst_45 {dimension_numbers = #tpu.dot_dimension_numbers<[1], [0], [0], [1], [0, 0, 1, 1], [], []>} : vector<16x16xbf16>, vector<16x256xbf16>, vector<16x256xf32> -> vector<16x256xf32>
    %89 = arith.addf %82, %88 : vector<16x256xf32>
    %90 = vector.extract_strided_slice %47 {offsets = [0, 33], sizes = [16, 256], strides = [1, 1]} : vector<16x290xbf16> to vector<16x256xbf16>
    %c0_46 = arith.constant 0 : index
    %c112 = arith.constant 112 : index
    %91 = vector.load %arg8[%c0_46, %c112] : memref<16x144xbf16, #tpu.memory_space<vmem>>, vector<16x16xbf16>
    %cst_47 = arith.constant dense<0.000000e+00> : vector<16x256xf32>
    %92 = tpu.matmul %91, %90, %cst_47 {dimension_numbers = #tpu.dot_dimension_numbers<[1], [0], [0], [1], [0, 0, 1, 1], [], []>} : vector<16x16xbf16>, vector<16x256xbf16>, vector<16x256xf32> -> vector<16x256xf32>
    %93 = arith.addf %89, %92 : vector<16x256xf32>
    %94 = vector.extract_strided_slice %47 {offsets = [0, 34], sizes = [16, 256], strides = [1, 1]} : vector<16x290xbf16> to vector<16x256xbf16>
    %cst_48 = arith.constant 0.000000e+00 : f32
    %95 = arith.truncf %cst_48 : f32 to bf16
    %96 = vector.broadcast %95 : bf16 to vector<16x256xbf16>
    %97 = arith.select %14, %94, %96 : vector<16x256xi1>, vector<16x256xbf16>
    %c0_49 = arith.constant 0 : index
    %c128 = arith.constant 128 : index
    %98 = vector.load %arg8[%c0_49, %c128] : memref<16x144xbf16, #tpu.memory_space<vmem>>, vector<16x16xbf16>
    %cst_50 = arith.constant dense<0.000000e+00> : vector<16x256xf32>
    %99 = tpu.matmul %98, %97, %cst_50 {dimension_numbers = #tpu.dot_dimension_numbers<[1], [0], [0], [1], [0, 0, 1, 1], [], []>} : vector<16x16xbf16>, vector<16x256xbf16>, vector<16x256xf32> -> vector<16x256xf32>
    %100 = arith.addf %93, %99 : vector<16x256xf32>
    %c0_51 = arith.constant 0 : index
    %c0_52 = arith.constant 0 : index
    %101 = vector.load %arg9[%c0_51, %c0_52] : memref<16x1xf32, #tpu.memory_space<vmem>>, vector<16x1xf32>
    %102 = vector.broadcast %101 : vector<16x1xf32> to vector<16x256xf32>
    %103 = arith.addf %100, %102 : vector<16x256xf32>
    %104 = arith.truncf %103 : vector<16x256xf32> to vector<16x256xbf16>
    %105 = vector.shape_cast %104 : vector<16x256xbf16> to vector<1x16x256xbf16>
    %c0_53 = arith.constant 0 : index
    %c0_54 = arith.constant 0 : index
    %c0_55 = arith.constant 0 : index
    %106 = vector.load %arg11[%c0_53, %c0_54, %c0_55] : memref<1x16x256xbf16, #tpu.memory_space<vmem>>, vector<1x16x256xbf16>
    tpu.vector_store %arg11[%c0_53, %c0_54, %c0_55], %105 {strides = array<i32>} : memref<1x16x256xbf16, #tpu.memory_space<vmem>>, vector<1x16x256xbf16>,
    return
  }
  func.func @transform_0(%arg0: i32) -> (i32, i32, i32) {
    %c0_i32 = arith.constant 0 : i32
    %c0_i32_0 = arith.constant 0 : i32
    %c0_i32_1 = arith.constant 0 : i32
    return %arg0, %c0_i32, %c0_i32_0 : i32, i32, i32
  }
  func.func @transform_1(%arg0: i32) -> (i32, i32, i32) {
    %c0_i32 = arith.constant 0 : i32
    %c0_i32_0 = arith.constant 0 : i32
    %c0_i32_1 = arith.constant 0 : i32
    return %arg0, %c0_i32, %c0_i32_0 : i32, i32, i32
  }
  func.func @transform_2(%arg0: i32) -> (i32, i32) {
    %c0_i32 = arith.constant 0 : i32
    %c0_i32_0 = arith.constant 0 : i32
    %c0_i32_1 = arith.constant 0 : i32
    return %c0_i32, %c0_i32_0 : i32, i32
  }
  func.func @transform_3(%arg0: i32) -> (i32, i32) {
    %c0_i32 = arith.constant 0 : i32
    %c0_i32_0 = arith.constant 0 : i32
    %c0_i32_1 = arith.constant 0 : i32
    return %c0_i32, %c0_i32_0 : i32, i32
  }
  func.func @transform_4(%arg0: i32) -> (i32, i32) {
    %c0_i32 = arith.constant 0 : i32
    %c0_i32_0 = arith.constant 0 : i32
    %c0_i32_1 = arith.constant 0 : i32
    return %c0_i32, %c0_i32_0 : i32, i32
  }
  func.func @transform_5(%arg0: i32) -> (i32, i32) {
    %c0_i32 = arith.constant 0 : i32
    %c0_i32_0 = arith.constant 0 : i32
    %c0_i32_1 = arith.constant 0 : i32
    return %c0_i32, %c0_i32_0 : i32, i32
  }
  func.func @transform_6(%arg0: i32) -> (i32, i32) {
    %c0_i32 = arith.constant 0 : i32
    %c0_i32_0 = arith.constant 0 : i32
    %c0_i32_1 = arith.constant 0 : i32
    return %c0_i32, %c0_i32_0 : i32, i32
  }
  func.func @transform_7(%arg0: i32) -> (i32, i32) {
    %c0_i32 = arith.constant 0 : i32
    %c0_i32_0 = arith.constant 0 : i32
    %c0_i32_1 = arith.constant 0 : i32
    return %c0_i32, %c0_i32_0 : i32, i32
  }
  func.func @transform_8(%arg0: i32) -> (i32, i32) {
    %c0_i32 = arith.constant 0 : i32
    %c0_i32_0 = arith.constant 0 : i32
    %c0_i32_1 = arith.constant 0 : i32
    return %c0_i32, %c0_i32_0 : i32, i32
  }
  func.func @transform_9(%arg0: i32) -> (i32, i32) {
    %c0_i32 = arith.constant 0 : i32
    %c0_i32_0 = arith.constant 0 : i32
    %c0_i32_1 = arith.constant 0 : i32
    return %c0_i32, %c0_i32_0 : i32, i32
  }
  func.func @transform_10(%arg0: i32) -> (i32, i32, i32) {
    %c0_i32 = arith.constant 0 : i32
    %c0_i32_0 = arith.constant 0 : i32
    %c0_i32_1 = arith.constant 0 : i32
    return %arg0, %c0_i32, %c0_i32_0 : i32, i32, i32
  }
  func.func @transform_11(%arg0: i32) -> (i32, i32, i32) {
    %c0_i32 = arith.constant 0 : i32
    %c0_i32_0 = arith.constant 0 : i32
    %c0_i32_1 = arith.constant 0 : i32
    return %arg0, %c0_i32, %c0_i32_0 : i32, i32, i32
  }
}

</mosaic_0001>

<bundles_post_ra>
// kernel: tpu_custom_call.1
= control target key start
LH: loop header
LB: loop body
LE: loop exit
PB: predicated region body
PF: predicated region fallthrough
CT: control target
= control target key end

     0   :  { %s2429_s0 = inlined_call_operand.vmem [shape: bf16[2,8,256], index: 0, kind: input, shape index: {}]   ;;  %s2430_s1 = inlined_call_operand.vmem [shape: bf16[2,16,64], index: 1, kind: input, shape index: {}]   ;;  %s2431_s2 = inlined_call_operand.hbm [shape: bf16[64,256], index: 2, kind: input, shape index: {}]   ;;  %s2432_s3 = inlined_call_operand.vmem [shape: bf16[18,8], index: 3, kind: input, shape index: {}]   ;;  %s2433_s4 = inlined_call_operand.vmem [shape: bf16[2,16], index: 4, kind: input, shape index: {}]   ;;  %s2434_s5 = inlined_call_operand.vmem [shape: f32[16,1], index: 5, kind: input, shape index: {}]   ;;  %s2435_s6 = inlined_call_operand.vmem [shape: f32[2,1], index: 6, kind: input, shape index: {}]   ;;  %s2436_s7 = inlined_call_operand.vmem [shape: bf16[16,144], index: 7, kind: input, shape index: {}]   ;;  %s2437_s8 = inlined_call_operand.vmem [shape: f32[16,1], index: 8, kind: input, shape index: {}]   ;;  %s2438_s9 = inlined_call_operand.vmem [shape: f32[2,256], index: 9, kind: input, shape index: {}]   ;;  %s2439_s10 = inlined_call_operand.hbm [shape: bf16[2,16,256], index: 10, kind: output, shape index: {0}]   ;;  %s2440_s11 = inlined_call_operand.hbm [shape: bf16[2,16,256], index: 11, kind: output, shape index: {1}]  }
   0x1   :  { %2448 = sst [smem:[#allocation12_spill]] %s2429_s0 }
   0x2   :  { %17 = vsyncpa [#allocation3], 0 }
   0x3   :  { %18 = vsyncpa [#allocation4], 0 }
   0x4   :  { %20 = vsyncpa [#allocation4 + $0x1], 0 }
   0x5   :  { %21 = vsyncpa [#allocation7], 0 }
   0x6   :  { %23 = vsyncpa [#allocation7 + $0x1], 0  ;;  %s2060_s17 = smov 0   ;;  %s2062_s18 = smov 0  }
   0x7   :  { %s2064_s19 = smov 0   ;;  %s2066_s20 = smov 0  }
   0x8 LB: > { %s2081_s21 = sadd.s32 4294967295, %s1973_s20   ;;  %s1645_s22 = sadd.s32 4294967294, %s1973_s20   ;;  %s1973_s20 = sphi %s2066_s20, %s2469_s20   ;;  %s1969_s19 = sphi %s2064_s19, %s2468_s19   ;;  %s1965_s18 = sphi %s2062_s18, %s2467_s18   ;;  %s1961_s17 = sphi %s2060_s17, %s2466_s17  }
   0x9   : > { %s2085_s23 = sadd.s32 1, %s1973_s20   ;;  %s256_s24 = sadd.s32 1, %s1969_s19 }
   0xa   : > { %s253_s25 = ssub.s32 %s1973_s20, %s2085_s23  ;;  %p266_p0 = scmp.ne.s32.totalorder %s1969_s19, %s1965_s18 }
   0xb   : > { %p254_p1 = scmp.eq.s32.totalorder %s253_s25, 0  ;;  %p267_p2 = scmp.eq.s32.totalorder %s2081_s21, 1 }
   0xc   : > { %p272_p3 = scmp.ne.s32.totalorder %s1965_s18, %s1961_s17  ;;  %p273_p4 = scmp.eq.s32.totalorder %s1645_s22, 1 }
   0xd   : > { %s2096_s26 = scalar_select %p254_p1, %s1969_s19, %s256_s24  }
   0xe   : > { %p2098_p5 = por %p267_p2, %p266_p0  ;;  %p2102_p6 = por %p273_p4, %p272_p3 }
   0xf   : > { %2449 = sst [smem:[#allocation11_spill]] %s2096_s26  ;;  %p1646_p7 = scmp.ge.s32.totalorder %s1973_s20, 1 }
  0x10   : > { %s2450_s27 = scalar_select %p2098_p5, 1, 0 }
  0x11   : > { %s2451_s28 = scalar_select %p2102_p6, 1, 0 }
  0x12   : > { %p306_p8 = scmp.lt.s32.totalorder %s1973_s20, 3  ;;  %p2441_p9 = scmp.eq.s32.totalorder %s2081_s21, 0 }
  0x13   : > { %s1975_s30 = smov [#allocation2]   ;;  %s1847_s16 = scalar_lea.hbm %s2431_s2, 1024 }
  0x14   : > { %p2109_p10 = pnand %p1646_p7, %p306_p8  ;;  %s318_s12 = sshll.u32 %s1975_s30, 4  ;;  %s319_s12 = int_to_ptr.vmem [resolvable:$true] %s318_s12 }
  0x15   : > { %p1848_p13 = scmp.ne.s32.totalorder %s2431_s2, %s1847_s16  ;;  %p1854_p3 = scmp.lt.u32.totalorder %s1847_s16, %s2431_s2 }
  0x16   : > { %s2452_s29 = scalar_select %p2109_p10, 1, 0 }
  0x17   : > { %p1749_p11 = pneg %p2109_p10 }
  0x19   : > { %p2117_p12 = pnand %p2441_p9, %p1749_p11 }
  0x1b   : > { %p1849_p0 = pneg %p2117_p12 }
  0x1d   : > { %p1850_p1 = pnand %p1849_p0, %p1848_p13 }
  0x1f   : > { %p1851_p2 = pneg %p1850_p1 }
  0x21   : > { %p1856_p4 = pnand %p1854_p3, %p1851_p2 }
  0x23   : > { %1859 = shalt.err (!%p1856_p4)
}
  0x24   : > { %s1860_s26 = scalar_lea.vmem %s319_s12, 1024  ;;  %p1868_p9 = scmp.lt.s32.totalorder %s319_s12, %s319_s12 }
  0x25   : > { %p1861_p7 = scmp.ne.s32.totalorder %s319_s12, %s1860_s26  ;;  %p1869_p6 = scmp.lt.s32.totalorder %s1860_s26, %s1860_s26 }
  0x27   : > { %p1863_p8 = pnand %p1861_p7, %p1849_p0  ;;  %p1870_p5 = por %p1869_p6, %p1868_p9 }
  0x29   : > { %p1864_p11 = pneg %p1863_p8 }
  0x2b   : > { %p1871_p10 = pnand %p1870_p5, %p1864_p11 }
  0x2d   : > { %1874 = shalt.err (!%p1871_p10)
}
  0x2e   : > { %s1976_s14 = smov 128   ;;  %s1977_s15 = smov 8  }
  0x2f   : > { %1752 = dma.hbm_to_vmem [thread:$0]  (!%p2117_p12), %s2431_s2, 1024, %s319_s12, [#allocation3], %s1976_s14, %s1976_s14, %s1977_s15  }
  0x30   : > { %p2454_p13 = scmp.ne.s32.totalorder %s2452_s29, 0 }
  0x31   : > { %p2455_p1 = scmp.eq.s32.totalorder (!%p2454_p13), %s2081_s21, 0 }
  0x32   : > { %371 = sbr.rel (%p2454_p13) target bundleno = 1151 (0x47f), region = 60 }
  0x39   : > { %1948 = dma.done.wait (%p2455_p1), [#allocation3], 1024   ;;  %p2456_p0 = pmov %p2455_p1 }
  0x3a   : > { %p421_p5 = scmp.lt.s32.totalorder %s2081_s21, 1  ;;  %v1978_v0 = vmov 0   ;;  %v1820_v1 = vld [vmem:[#allocation2 + $0x4] ss:$8 sps:$4 sm:$0xff]   ;;  %v1822_v2 = vld [vmem:[#allocation2] ss:$8 sps:$4 sm:$0xff]   ;;  %v439_v34 = vlaneseq }
  0x3b   : > { %1950 = vsyncadd (%p2456_p0), [#allocation3], 4294966272  ;;  %568 = vmatprep.mubr.bf16.mxu1 %v1978_v0  ;;  %1818 = vset.pattern.permute.xlu0 %v1978_v0  ;;  %v1823_v3 = vld [vmem:[#allocation2 + $0x14] ss:$8 sps:$4 sm:$0xff]   ;;  %v1825_v4 = vld [vmem:[#allocation2 + $0x10] ss:$8 sps:$4 sm:$0xff]  }
  0x3c   : > { %1819 = vset.pattern.permute.xlu1 %v1978_v0  ;;  %1004 = vmatprep.mubr.bf16.mxu0 %v1978_v0  ;;  %s422_s26 = scalar_select %p421_p5, %s2081_s21, 1  ;;  %v1826_v5 = vld [vmem:[#allocation2 + $0x24] ss:$8 sps:$4 sm:$0xff]   ;;  %v1828_v6 = vld [vmem:[#allocation2 + $0x20] ss:$8 sps:$4 sm:$0xff]   ;;  %vm604_vm0 = vcmask 1043456  }
  0x3d   : > { %536 = vmatprep.subr.bf16.mxu1 %v1820_v1  ;;  %s2457_s0 = sld [smem:[#allocation12_spill]]  ;;  %v1829_v7 = vld [vmem:[#allocation2 + $0x34] ss:$8 sps:$4 sm:$0xff]   ;;  %v1831_v9 = vld [vmem:[#allocation2 + $0x30] ss:$8 sps:$4 sm:$0xff]   ;;  %vm532_vm1 = vcmask 523264  }
  0x3e   : > { %s1701_s29 = sshll.u32 %s422_s26, 3  ;;  %537 = vmatpush1.bf16.msra.mxu1 %v1822_v2  ;;  %v1835_v14 = vld [vmem:[%s2432_s3] sm:$0xff]   ;;  %vm597_vm2 = vcmask 64512   ;;  %v1836_v15 = vld [vmem:[%s2432_s3 + $0x8] ss:$0 sps:$4 sm:$0x11]  }
  0x3f   : > { %538 = vmatprep.subr.bf16.mxu1 %v1823_v3  ;;  %s430_s16 = scalar_lea.vmem %s2430_s1, %s1701_s29  ;;  %v726_v16 = vld [vmem:[%s2435_s6] sm:$0x3]  ;;  %v663_v17 = vld [vmem:[%s2434_s5 + $0x8] sm:$0xff]  ;;  %vm679_vm3 = vcmask 130048   ;;  %v440_v35 = vshrl.u32 %v439_v34, 7  ;;  %s1979_s26 = smov 2  }
  0x40   : > { %v1832_v12 = vld [vmem:[%s430_s16] sm:$0xff]   ;;  %729 = vperm.xlu0 %1818, %v726_v16   ;;  %671 = vperm.xlu1 %1819, %v663_v17   ;;  %s1980_s13 = smov 17   ;;  %s1981_s25 = smov 16   ;;  %vm945_vm10 = vcmask 15360   ;;  %vm792_vm11 = vcmask 138240  }
  0x41   : > { %v662_v18 = vld [vmem:[%s2434_s5] sm:$0xff]  ;;  %v461_v37 = vsub.s32 1, %v440_v35  ;;  %v465_v38 = vsub.s32 3, %v440_v35  ;;  %v811_v43 = vsub.s32 4, %v440_v35  ;;  %v2199_v44 = vsub.s32 0, %v440_v35  ;;  %s1982_s30 = smov 18  }
  0x42   : > { %539 = vmatpush1.bf16.msra.mxu1 %v1825_v4  ;;  %v678_v25 = vld [vmem:[%s2433_s4] sm:$0x1]  ;;  %v445_v46 = vsub.s32 2, %v440_v35  ;;  %s1984_s15 = smov 126   ;;  %s1989_s22 = smov 111  }
  0x43   : > { %s425_s14 = scalar_lea.vmem %s2457_s0, %s1701_s29  ;;  %540 = vmatprep.subr.bf16.mxu1 %v1826_v5  ;;  %v437_v36 = vld [vmem:[%s2438_s9] sm:$0xf]  ;;  %s2218_s29 = sand.u32 1, %s1965_s18  }
  0x44   : > { %v434_v8 = vld [vmem:[%s425_s14] sm:$0xff]  ;;  %666 = vperm.xlu0 %1818, %v662_v18   ;;  %v462_v39 = vrot.slane %v437_v36, %v461_v37  ;;  %v466_v40 = vrot.slane %v437_v36, %v465_v38  ;;  %v442_v49 = vrot.slane %v437_v36, %v2199_v44  ;;  %v446_v50 = vrot.slane %v437_v36, %v445_v46  ;;  %s2444_s12 = sshll.u32 %s2218_s29, 4  ;;  %s1983_s14 = smov 32  }
  0x45   : > { %v1670_v10 = vcombine.high %v434_v8, %v434_v8  ;;  %v1669_v11 = vcombine.low %v434_v8, %v434_v8  ;;  %s2233_s16 = scalar_lea.vmem [#allocation6], %s2444_s12  ;;  %v2258_v46 = vld [vmem:[%s2436_s7] ss:$8 sps:$4 sm:$0xff]   ;;  %s1990_s24 = smov 64  }
  0x46   : > { %541 = vmatpush1.bf16.msra.mxu1 %v1828_v6  ;;  %v472_v41 = vrot.slane %v462_v39, %v461_v37  ;;  %v476_v42 = vrot.slane %v466_v40, %v461_v37  ;;  %v452_v51 = vrot.slane %v442_v49, %v2199_v44  ;;  %v456_v52 = vrot.slane %v446_v50, %v2199_v44  ;;  %p2458_p9 = scmp.ne.s32.totalorder %s2450_s27, 0 }
  0x47   : > { %542 = vmatprep.subr.bf16.mxu1 %v1829_v7  ;;  %v606_v13 = vsel %vm604_vm0, %v1669_v11, 0 }
  0x48   : > { %vm477_vm4 = vcmp.gt.f32.partialorder %v472_v41, 0.5  ;;  %vm478_vm5 = vcmp.gt.f32.partialorder %v476_v42, 0.5  ;;  %vm457_vm7 = vcmp.gt.f32.partialorder %v452_v51, 0.5  ;;  %vm458_vm8 = vcmp.gt.f32.partialorder %v456_v52, 0.5 }
  0x49   : > { %vm931_vm6 = vmpackc.low %vm478_vm5, %vm477_vm4 }
  0x4a   : > { %543 = vmatpush1.bf16.msra.mxu1 %v1831_v9  ;;  %v932_v45 = vsel %vm931_vm6, 65537, %v1978_v0  ;;  %vm803_vm9 = vmpackc.low %vm458_vm8, %vm457_vm7  ;;  %vm1242_vm6 = vcmask 261120  }
  0x4b   : > { %1671 = vmatprep.subr.msk.bf16.mxu1 %vm604_vm0, %v1670_v10  ;;  %v2203_v47 = vrot.slane %v932_v45, %v2199_v44  ;;  %v2205_v48 = vrot.slane %v932_v45, %v811_v43  ;;  %v804_v53 = vsel %vm803_vm9, 65537, %v1978_v0 }
  0x4c   : > { %v2213_v54 = vrot.slane %v804_v53, %v811_v43 }
  0x4d   : > { %1666 = vmatmul.mubr.msk.bf16.vlgmr.msra.gmra.mrb[0].mxu1 %vm532_vm1, %v1832_v12  ;;  %941 = vrot.lane.b32.xlu1 %v2203_v47, %s1979_s26 }
  0x4e   : > { %612 = vmatpush1.bf16.msra.mxu1 %v606_v13  ;;  %643 = vmatprep.mubr.bf16.mxu1 %v1978_v0 }
  0x4f   : > { %943 = vrot.lane.b32.xlu0 %v2205_v48, %s1979_s26  ;;  %s1985_s26 = smov 96  }
  0x55   : > { %1672 = vmatmul.mubr.msk.bf16.vlgmr.msra.gmra.mrb[4].mxu1 %vm597_vm2, %v1835_v14 }
  0x56   : > { %653 = vmatprep.mubr.bf16.mxu1 %v1978_v0 }
  0x5d   : > { %1673 = vmatmul.mubr.msk.bf16.gmra.mrb[8].mxu1 %vm597_vm2, %v1836_v15  ;;  %vm1164_vm2 = vcmask 146432  }
  0x5e   : > { %715 = vmatprep.mubr.bf16.mxu1 %v1978_v0 }
  0xbf   : > { %v730_v58 = vpop.permute.xlu0 %729  ;;  %v672_v7 = vpop.permute.xlu1 %671 }
  0xc3   : > { %v667_v8 = vpop.permute.xlu0 %666 }
 0x120   : > { %v2173_v19 = vpop.f32.mrb[0].mxu1 }
 0x121   : > { %v2175_v20 = vpop.f32.mrb[1].mxu1 }
 0x122   : > { %v2177_v21 = vpop.f32.mrb[2].mxu1 }
 0x123   : > { %v579_v22 = vpack.c.bf16 %v2177_v21, %v2173_v19  ;;  %v2181_v23 = vpop.f32.mrb[3].mxu1 }
 0x124   : > { %v580_v24 = vpack.c.bf16 %v2181_v23, %v2175_v20 }
 0x126   : > { %683 = vmatprep.subr.bf16.mxu1 %v580_v24 }
 0x127   : > { %684 = vmatpush1.bf16.msra.mxu1 %v579_v22 }
 0x128   : > { %v2188_v26 = vpop.f32.mrb[4].mxu1 }
 0x129   : > { %v2190_v27 = vpop.f32.mrb[5].mxu1  ;;  %v674_v12 = vadd.f32 %v667_v8, %v2188_v26 }
 0x12a   : > { %1674 = vmatmul.mubr.msk.bf16.vlgmr.msra.gmra.mrb[12].mxu1 %vm679_vm3, %v678_v25  ;;  %v649_v28 = vpop.f32.mrb[6].mxu1  ;;  %v675_v15 = vadd.f32 %v667_v8, %v2190_v27 }
 0x12b   : > { %v2193_v29 = vpop.f32.mrb[7].mxu1  ;;  %874 = vmatprep.mubr.bf16.mxu1 %v1978_v0  ;;  %v676_v11 = vadd.f32 %v672_v7, %v649_v28 }
 0x12c   : > { %v677_v16 = vadd.f32 %v672_v7, %v2193_v29 }
 0x130   : > { %v655_v30 = vpop.f32.mrb[8].mxu1 }
 0x131   : > { %v657_v31 = vpop.f32.mrb[9].mxu1 }
 0x132   : > { %v659_v32 = vpop.f32.mrb[10].mxu1 }
 0x133   : > { %v660_v33 = vpop.f32.mrb[11].mxu1 }
 0x1fd   : > { %v717_v55 = vpop.f32.mrb[12].mxu1 }
 0x1fe   : > { %v724_v56 = vadd.f32 %v717_v55, %v655_v30  ;;  %v719_v57 = vpop.f32.mrb[13].mxu1 }
 0x1ff   : > { %v725_v59 = vadd.f32 %v719_v57, %v657_v31  ;;  %v721_v60 = vpop.f32.mrb[14].mxu1 }
 0x200   : > { %v732_v61 = vadd.f32 %v730_v58, %v724_v56  ;;  %v722_v62 = vpop.f32.mrb[15].mxu1 }
 0x201   : > { %v733_v63 = vadd.f32 %v730_v58, %v725_v59 }
 0x202   : > { %v1675_v1 = vmul.f32 -1.442695, %v732_v61 }
 0x203   : > { %v1676_v2 = vmul.f32 -1.442695, %v733_v63 }
 0x204   : > { %1839 = vpow2.f32 %v1675_v1 }
 0x205   : > { %1841 = vpow2.f32 %v1676_v2 }
 0x20e   : > { %v1840_v3 = vpop.eup %1839 }
 0x20f   : > { %v1842_v4 = vpop.eup %1841  ;;  %v740_v5 = vadd.f32 1.0, %v1840_v3 }
 0x210   : > { %v741_v6 = vadd.f32 1.0, %v1842_v4 }
 0x211   : > { %1843 = vrcp.f32 %v740_v5 }
 0x212   : > { %1845 = vrcp.f32 %v741_v6 }
 0x21b   : > { %v1844_v9 = vpop.eup %1843 }
 0x21c   : > { %v1846_v10 = vpop.eup %1845  ;;  %v749_v13 = vrot.slane %v1844_v9, %v2199_v44  ;;  %v761_v14 = vrot.slane %v1844_v9, %v461_v37 }
 0x21d   : > { %v753_v17 = vrot.slane %v1846_v10, %v2199_v44  ;;  %v765_v18 = vrot.slane %v1846_v10, %v461_v37 }
 0x21e   : > { %v754_v22 = vmul.f32 %v749_v13, %v674_v12  ;;  %v756_v24 = vmul.f32 %v749_v13, %v676_v11  ;;  %v766_v25 = vmul.f32 %v761_v14, %v2173_v19  ;;  %v768_v28 = vmul.f32 %v761_v14, %v2177_v21  ;;  %v944_v21 = vpop.permute.xlu0 %943 }
 0x21f   : > { %v755_v26 = vmul.f32 %v753_v17, %v675_v15  ;;  %v757_v30 = vmul.f32 %v753_v17, %v677_v16  ;;  %v767_v31 = vmul.f32 %v765_v18, %v2175_v20  ;;  %v769_v32 = vmul.f32 %v765_v18, %v2181_v23  ;;  %v942_v20 = vpop.permute.xlu1 %941  ;;  %v1462_v17 = vld [vmem:[%s2437_s8] sm:$0xff] }
 0x220   : > { %v770_v27 = vadd.f32 %v766_v25, %v754_v22  ;;  %v772_v33 = vadd.f32 %v768_v28, %v756_v24  ;;  %v2229_v19 = vrot.slane %v804_v53, %v2199_v44  ;;  %v946_v23 = vsel %vm945_vm10, %v942_v20, %v944_v21 }
 0x221   : > { %v771_v29 = vadd.f32 %v767_v31, %v755_v26  ;;  %v773_v34 = vadd.f32 %v769_v32, %v757_v30  ;;  %vm948_vm12 = vcmp.ne.s16.totalorder %v946_v23, 0  ;;  %vm949_vm13 = vcmp.ne.s16.totalorder %v944_v21, 0  ;;  %v1463_v26 = vld [vmem:[%s2437_s8 + $0x8] sm:$0xff] }
 0x222   : > { %v774_v35 = vpack.c.bf16 %v772_v33, %v770_v27  ;;  %vm947_vm14 = vcmp.ne.s16.totalorder %v942_v20, 0 }
 0x223   : > { %v775_v36 = vpack.c.bf16 %v773_v34, %v771_v29  ;;  %v1703_v37 = vpack.c.bf16 %v771_v29, %v770_v27  ;;  %v1704_v38 = vpack.c.bf16 %v773_v34, %v772_v33 }
 0x224   : > { %788 = vrot.lane.b32.xlu1 %v774_v35, %s1980_s13 }
 0x225   : > { %790 = vrot.lane.b32.xlu0 %v775_v36, %s1980_s13  ;;  %786 = vst [vmem:[%s2233_s16] sm:$0xff] %v1703_v37  ;;  %787 = vst [vmem:[%s2233_s16 + $0x8] sm:$0xff] %v1704_v38  ;;  %s1986_s13 = smov 34  }
 0x228   : > { %1019 = vrot.lane.b32.xlu1 %v2229_v19, %s1981_s25 }
 0x229   : > { %1021 = vrot.lane.b32.xlu0 %v2213_v54, %s1981_s25 }
 0x22c   : > { %1160 = vrot.lane.b32.xlu1 %v2203_v47, %s1982_s30 }
 0x22d   : > { %1162 = vrot.lane.b32.xlu0 %v2205_v48, %s1982_s30  ;;  %s1987_s30 = smov 112  }
 0x230   : > { %1238 = vrot.lane.b32.xlu1 %v2229_v19, %s1983_s14 }
 0x231   : > { %1240 = vrot.lane.b32.xlu0 %v2213_v54, %s1983_s14 }
 0x296   : > { %v789_v39 = vpop.permute.xlu1 %788 }
 0x297   : > { %v791_v40 = vpop.permute.xlu0 %790  ;;  %v2253_v45 = vsel %vm792_vm11, 0, %v789_v39 }
 0x298   : > { %v2247_v41 = vsel %vm792_vm11, %v789_v39, %v791_v40  ;;  %v2249_v42 = vsel %vm792_vm11, %v791_v40, 0  ;;  %v950_v51 = vsel %vm947_vm14, %v2253_v45, 0  ;;  %vm964_vm11 = vcmask 1031168  }
 0x299   : > { %v952_v43 = vsel %vm949_vm13, %v2249_v42, 0  ;;  %v951_v44 = vsel %vm948_vm12, %v2247_v41, 0  ;;  %vm1383_vm12 = vcmask 277504  }
 0x29a   : > { %962 = vrot.lane.b32.xlu0 %v952_v43, %s1984_s15  ;;  %960 = vrot.lane.b32.xlu1 %v951_v44, %s1984_s15  ;;  %v1020_v49 = vpop.permute.xlu1 %1019 }
 0x29b   : > { %v1022_v50 = vpop.permute.xlu0 %1021  ;;  %vm1025_vm1 = vcmp.ne.s16.totalorder %v1020_v49, 0 }
 0x29c   : > { %v1024_v52 = vsel %vm679_vm3, %v1020_v49, %v1022_v50  ;;  %vm1027_vm0 = vcmp.ne.s16.totalorder %v1022_v50, 0  ;;  %v1028_v56 = vsel %vm1025_vm1, %v2253_v45, 0  ;;  %vm1105_vm1 = vcmask 908288  }
 0x29d   : > { %vm1026_vm15 = vcmp.ne.s16.totalorder %v1024_v52, 0  ;;  %v1030_v53 = vsel %vm1027_vm0, %v2249_v42, 0 }
 0x29e   : > { %953 = vrot.lane.b32.xlu0 %v2258_v46, %s1985_s26  ;;  %958 = vrot.lane.b32.xlu1 %v950_v51, %s1984_s15  ;;  %v1029_v55 = vsel %vm1026_vm15, %v2247_v41, 0  ;;  %s1988_s15 = smov 80   ;;  %vm1042_vm15 = vcmask 916480  }
 0x2a2   : > { %1381 = vrot.lane.b32.xlu0 %v2205_v48, %s1986_s13  ;;  %1379 = vrot.lane.b32.xlu1 %v2203_v47, %s1986_s13  ;;  %v1161_v48 = vpop.permute.xlu1 %1160  ;;  %v1163_v47 = vpop.permute.xlu0 %1162  ;;  %s1991_s13 = smov 110  }
 0x2a3   : > { %v1165_v57 = vsel %vm1164_vm2, %v1161_v48, %v1163_v47  ;;  %vm1168_vm5 = vcmp.ne.s16.totalorder %v1163_v47, 0  ;;  %vm1166_vm7 = vcmp.ne.s16.totalorder %v1161_v48, 0  ;;  %vm1183_vm2 = vcmask 900096  }
 0x2a4   : > { %vm1167_vm4 = vcmp.ne.s16.totalorder %v1165_v57, 0  ;;  %v1171_v60 = vsel %vm1168_vm5, %v2249_v42, 0  ;;  %v1169_v63 = vsel %vm1166_vm7, %v2253_v45, 0  ;;  %vm834_vm5 = vcmask 1039360  }
 0x2a5   : > { %v1170_v61 = vsel %vm1167_vm4, %v2247_v41, 0  ;;  %vm1261_vm4 = vcmask 785408   ;;  %vm814_vm7 = vcmp.ne.s16.totalorder %v2213_v54, 0 }
 0x2a6   : > { %1040 = vrot.lane.b32.xlu0 %v1030_v53, %s1987_s30  ;;  %1038 = vrot.lane.b32.xlu1 %v1029_v55, %s1987_s30  ;;  %v1239_v58 = vpop.permute.xlu1 %1238  ;;  %v1241_v59 = vpop.permute.xlu0 %1240 }
 0x2a7   : > { %v1243_v62 = vsel %vm1242_vm6, %v1239_v58, %v1241_v59  ;;  %vm1246_vm9 = vcmp.ne.s16.totalorder %v1241_v59, 0  ;;  %vm1244_vm10 = vcmp.ne.s16.totalorder %v1239_v58, 0  ;;  %vm1324_vm6 = vcmask 777216  }
 0x2a8   : > { %vm1245_vm8 = vcmp.ne.s16.totalorder %v1243_v62, 0  ;;  %v1249_v1 = vsel %vm1246_vm9, %v2249_v42, 0  ;;  %v1247_v3 = vsel %vm1244_vm10, %v2253_v45, 0  ;;  %vm1407_vm9 = vcmask 769024  }
 0x2a9   : > { %v1248_v2 = vsel %vm1245_vm8, %v2247_v41, 0  ;;  %vm813_vm8 = vcmp.ne.s16.totalorder %v2229_v19, 0 }
 0x2aa   : > { %1031 = vrot.lane.b32.xlu0 %v2258_v46, %s1988_s15  ;;  %1036 = vrot.lane.b32.xlu1 %v1028_v56, %s1987_s30  ;;  %s1992_s15 = smov 48   ;;  %v815_v58 = vsel %vm813_vm8, %v2253_v45, 0 }
 0x2ae   : > { %1103 = vrot.lane.b32.xlu0 %v2249_v42, %s1989_s22  ;;  %1101 = vrot.lane.b32.xlu1 %v2247_v41, %s1989_s22 }
 0x2b2   : > { %1097 = vrot.lane.b32.xlu0 %v2258_v46, %s1990_s24  ;;  %1099 = vrot.lane.b32.xlu1 %v2253_v45, %s1989_s22  ;;  %s1993_s22 = smov 127   ;;  %s1994_s24 = smov 95  }
 0x2b6   : > { %1181 = vrot.lane.b32.xlu0 %v1171_v60, %s1991_s13  ;;  %1179 = vrot.lane.b32.xlu1 %v1170_v61, %s1991_s13  ;;  %v1838_v61 = vld [vmem:[%s2436_s7 + $0x4] ss:$8 sps:$4 sm:$0xff]  }
 0x2ba   : > { %1172 = vrot.lane.b32.xlu0 %v2258_v46, %s1992_s15  ;;  %1177 = vrot.lane.b32.xlu1 %v1169_v63, %s1991_s13  ;;  %s1996_s15 = smov [#allocation6]  }
 0x2be   : > { %1259 = vrot.lane.b32.xlu0 %v1249_v1, %s1985_s26  ;;  %1257 = vrot.lane.b32.xlu1 %v1248_v2, %s1985_s26 }
 0x2c2   : > { %1250 = vrot.lane.b32.xlu0 %v2258_v46, %s1983_s14  ;;  %1255 = vrot.lane.b32.xlu1 %v1247_v3, %s1985_s26 }
 0x2c6   : > { %832 = vrot.lane.b32.xlu0 %v2249_v42, %s1993_s22  ;;  %830 = vrot.lane.b32.xlu1 %v2247_v41, %s1993_s22 }
 0x2ca   : > { %1322 = vrot.lane.b32.xlu0 %v2249_v42, %s1994_s24  ;;  %1320 = vrot.lane.b32.xlu1 %v2247_v41, %s1994_s24 }
 0x2ce   : > { %1318 = vrot.lane.b32.xlu0 %v2253_v45, %s1994_s24  ;;  %828 = vrot.lane.b32.xlu1 %v2253_v45, %s1993_s22  ;;  %s1527_s24 = sshll.u32 %s2233_s16, 4  ;;  %s1879_s16 = sshll.u32 %s1996_s15, 4  ;;  %s2345_s24 = int_to_ptr.vmem [resolvable:$true] %s1527_s24  ;;  %s1880_s16 = int_to_ptr.vmem [resolvable:$false] %s1879_s16 }
 0x2cf   : > { %s1875_s12 = scalar_lea.vmem %s2345_s24, 256  ;;  %s1881_s22 = scalar_lea.vmem %s1880_s16, 512 }
 0x2d0   : > { %p1876_p6 = scmp.ne.s32.totalorder %s2345_s24, %s1875_s12  ;;  %p1882_p2 = scmp.lt.s32.totalorder %s2345_s24, %s1880_s16 }
 0x2d1   : > { %p1883_p3 = scmp.lt.s32.totalorder %s1881_s22, %s1875_s12 }
 0x2d2   : > { %824 = vrot.lane.b32.xlu1 %v2258_v46, %s1987_s30  ;;  %1316 = vrot.lane.b32.xlu0 %v2258_v46, %s1981_s25  ;;  %s1995_s25 = smov 94   ;;  %p1877_p10 = pnand %p1876_p6, %p2458_p9 }
 0x2d3   : > { %p1884_p4 = por %p1883_p3, %p1882_p2 }
 0x2d4   : > { %p1878_p12 = pneg %p1877_p10 }
 0x2d6   : > { %p1885_p7 = pnand %p1884_p4, %p1878_p12 }
 0x30c   : > { %v961_v4 = vpop.permute.xlu1 %960  ;;  %v963_v5 = vpop.permute.xlu0 %962 }
 0x30d   : > { %v966_v6 = vsel %vm964_vm11, %v961_v4, %v963_v5 }
 0x30e   : > { %972 = vmatprep.subr.bf16.mxu0 %v966_v6 }
 0x310   : > { %v959_v7 = vpop.permute.xlu1 %958  ;;  %v954_v8 = vpop.permute.xlu0 %953 }
 0x311   : > { %v965_v9 = vsel %vm964_vm11, %v959_v7, %v961_v4 }
 0x312   : > { %973 = vmatpush1.bf16.msra.mxu0 %v965_v9 }
 0x314   : > { %v1380_v10 = vpop.permute.xlu1 %1379  ;;  %v1382_v11 = vpop.permute.xlu0 %1381 }
 0x315   : > { %v1384_v12 = vsel %vm1383_vm12, %v1380_v10, %v1382_v11  ;;  %vm1387_vm13 = vcmp.ne.s16.totalorder %v1382_v11, 0  ;;  %1683 = vmatmul.mubr.msk.bf16.vlgmr.msra.gmra.mrb[0].mxu0 %vm679_vm3, %v954_v8  ;;  %vm1385_vm0 = vcmp.ne.s16.totalorder %v1380_v10, 0 }
 0x316   : > { %vm1386_vm14 = vcmp.ne.s16.totalorder %v1384_v12, 0  ;;  %v1390_v13 = vsel %vm1387_vm13, %v2249_v42, 0  ;;  %1082 = vmatprep.mubr.bf16.mxu0 %v1978_v0  ;;  %v1388_v22 = vsel %vm1385_vm0, %v2253_v45, 0 }
 0x317   : > { %1405 = vrot.lane.b32.xlu0 %v1390_v13, %s1995_s25  ;;  %v1389_v14 = vsel %vm1386_vm14, %v2247_v41, 0 }
 0x318   : > { %v1039_v15 = vpop.permute.xlu1 %1038  ;;  %1403 = vrot.lane.b32.xlu1 %v1389_v14, %s1995_s25  ;;  %v1041_v16 = vpop.permute.xlu0 %1040 }
 0x319   : > { %v1044_v18 = vsel %vm1042_vm15, %v1039_v15, %v1041_v16 }
 0x31a   : > { %1050 = vmatprep.subr.bf16.mxu0 %v1044_v18 }
 0x31b   : > { %1466 = vperm.xlu0 %1818, %v1462_v17  }
 0x31c   : > { %v1037_v24 = vpop.permute.xlu1 %1036  ;;  %1401 = vrot.lane.b32.xlu1 %v1388_v22, %s1995_s25  ;;  %v1032_v25 = vpop.permute.xlu0 %1031  ;;  %s2445_s25 = sshll.u32 %s2081_s21, 8 }
 0x31d   : > { %v1043_v28 = vsel %vm1042_vm15, %v1037_v24, %v1039_v15  ;;  %s2343_s30 = scalar_lea.hbm %s2440_s11, %s2445_s25 }
 0x31e   : > { %1051 = vmatpush1.bf16.msra.mxu0 %v1043_v28 }
 0x320   : > { %v1102_v30 = vpop.permute.xlu1 %1101  ;;  %1471 = vperm.xlu1 %1819, %v1463_v26   ;;  %v1104_v31 = vpop.permute.xlu0 %1103 }
 0x321   : > { %1684 = vmatmul.mubr.msk.bf16.vlgmr.msra.gmra.mrb[0].mxu0 %vm679_vm3, %v1032_v25  ;;  %v1107_v32 = vsel %vm1105_vm1, %v1102_v30, %v1104_v31 }
 0x322   : > { %1113 = vmatprep.subr.bf16.mxu0 %v1107_v32  ;;  %1145 = vmatprep.mubr.bf16.mxu0 %v1978_v0 }
 0x324   : > { %v1100_v27 = vpop.permute.xlu1 %1099  ;;  %v1098_v33 = vpop.permute.xlu0 %1097 }
 0x325   : > { %v1106_v29 = vsel %vm1105_vm1, %v1100_v27, %v1102_v30 }
 0x326   : > { %1114 = vmatpush1.bf16.msra.mxu0 %v1106_v29 }
 0x328   : > { %v1180_v34 = vpop.permute.xlu1 %1179  ;;  %v1182_v35 = vpop.permute.xlu0 %1181 }
 0x329   : > { %v1185_v36 = vsel %vm1183_vm2, %v1180_v34, %v1182_v35 }
 0x32a   : > { %1191 = vmatprep.subr.bf16.mxu0 %v1185_v36 }
 0x32c   : > { %v1178_v37 = vpop.permute.xlu1 %1177  ;;  %v1173_v38 = vpop.permute.xlu0 %1172 }
 0x32d   : > { %v1184_v20 = vsel %vm1183_vm2, %v1178_v37, %v1180_v34  ;;  %1685 = vmatmul.mubr.msk.bf16.vlgmr.msra.gmra.mrb[0].mxu0 %vm679_vm3, %v1098_v33 }
 0x32e   : > { %1192 = vmatpush1.bf16.msra.mxu0 %v1184_v20  ;;  %1223 = vmatprep.mubr.bf16.mxu0 %v1978_v0 }
 0x330   : > { %v1258_v21 = vpop.permute.xlu1 %1257  ;;  %v1260_v23 = vpop.permute.xlu0 %1259 }
 0x331   : > { %v1263_v39 = vsel %vm1261_vm4, %v1258_v21, %v1260_v23 }
 0x332   : > { %1269 = vmatprep.subr.bf16.mxu0 %v1263_v39 }
 0x334   : > { %v1256_v40 = vpop.permute.xlu1 %1255  ;;  %v1251_v42 = vpop.permute.xlu0 %1250 }
 0x335   : > { %v1262_v49 = vsel %vm1261_vm4, %v1256_v40, %v1258_v21 }
 0x338   : > { %v831_v43 = vpop.permute.xlu1 %830  ;;  %v833_v44 = vpop.permute.xlu0 %832 }
 0x339   : > { %1686 = vmatmul.mubr.msk.bf16.vlgmr.msra.gmra.mrb[0].mxu0 %vm679_vm3, %v1173_v38  ;;  %v836_v50 = vsel %vm834_vm5, %v831_v43, %v833_v44 }
 0x33a   : > { %1270 = vmatpush1.bf16.msra.mxu0 %v1262_v49  ;;  %842 = vmatprep.subr.bf16.mxu1 %v836_v50 }
 0x33b   : > { %1301 = vmatprep.mubr.bf16.mxu0 %v1978_v0 }
 0x33c   : > { %v1321_v51 = vpop.permute.xlu1 %1320  ;;  %v1323_v52 = vpop.permute.xlu0 %1322 }
 0x33d   : > { %v1326_v53 = vsel %vm1324_vm6, %v1321_v51, %v1323_v52 }
 0x33e   : > { %1332 = vmatprep.subr.bf16.mxu0 %v1326_v53 }
 0x340   : > { %v829_v55 = vpop.permute.xlu1 %828  ;;  %v1319_v48 = vpop.permute.xlu0 %1318 }
 0x341   : > { %v835_v56 = vsel %vm834_vm5, %v829_v55, %v831_v43  ;;  %v1325_v57 = vsel %vm1324_vm6, %v1319_v48, %v1321_v51 }
 0x342   : > { %843 = vmatpush1.bf16.msra.mxu1 %v835_v56 }
 0x343   : > { %1681 = vmatprep.subr.msk.bf16.mxu1 %vm814_vm7, %v2247_v41 }
 0x344   : > { %v825_v47 = vpop.permute.xlu1 %824  ;;  %v1317_v54 = vpop.permute.xlu0 %1316 }
 0x345   : > { %1687 = vmatmul.mubr.msk.bf16.vlgmr.msra.gmra.mrb[0].mxu0 %vm679_vm3, %v1251_v42  ;;  %1680 = vmatmul.mubr.msk.bf16.vlgmr.msra.gmra.mrb[16].mxu1 %vm679_vm3, %v825_v47 }
 0x346   : > { %1333 = vmatpush1.bf16.msra.mxu0 %v1325_v57  ;;  %889 = vmatpush1.bf16.msra.mxu1 %v815_v58 }
 0x347   : > { %1364 = vmatprep.mubr.bf16.mxu0 %v1978_v0  ;;  %920 = vmatprep.mubr.bf16.mxu1 %v1978_v0 }
 0x351   : > { %1688 = vmatmul.mubr.msk.bf16.vlgmr.msra.gmra.mrb[0].mxu0 %vm679_vm3, %v1317_v54  ;;  %1682 = vmatmul.mubr.msk.bf16.vlgmr.msra.gmra.mrb[16].mxu1 %vm679_vm3, %v2258_v46 }
 0x352   : > { %1447 = vmatprep.mubr.bf16.mxu0 %v1978_v0 }
 0x389   : > { %v1406_v19 = vpop.permute.xlu0 %1405 }
 0x38a   : > { %v1404_v41 = vpop.permute.xlu1 %1403 }
 0x38b   : > { %v1409_v45 = vsel %vm1407_vm9, %v1404_v41, %v1406_v19 }
 0x38c   : > { %1415 = vmatprep.subr.bf16.mxu0 %v1409_v45 }
 0x38e   : > { %v1402_v59 = vpop.permute.xlu1 %1401 }
 0x38f   : > { %v1408_v60 = vsel %vm1407_vm9, %v1402_v59, %v1404_v41 }
 0x390   : > { %1416 = vmatpush1.bf16.msra.mxu0 %v1408_v60 }
 0x393   : > { %1690 = vmatmul.mubr.msk.bf16.vlgmr.msra.gmra.mrb[0].mxu0 %vm679_vm3, %v1838_v61 }
 0x394   : > { %1888 = shalt.err (!%p1885_p7)
}
 0x395   : > { %s1889_s14 = scalar_lea.hbm %s2343_s30, 256  ;;  %s1893_s15 = scalar_lea.hbm %s2440_s11, 512 }
 0x396   : > { %p1890_p8 = scmp.ne.s32.totalorder %s2343_s30, %s1889_s14  ;;  %p1894_p1 = scmp.lt.u32.totalorder %s2343_s30, %s2440_s11 }
 0x397   : > { %p1895_p0 = scmp.lt.u32.totalorder %s1893_s15, %s1889_s14  ;;  %p1897_p6 = scmp.lt.u32.totalorder %s1889_s14, %s2343_s30 }
 0x398   : > { %p1891_p11 = pnand %p1890_p8, %p2458_p9 }
 0x399   : > { %p1896_p5 = por %p1895_p0, %p1894_p1 }
 0x39a   : > { %p1892_p13 = pneg %p1891_p11 }
 0x39b   : > { %p1898_p10 = por %p1897_p6, %p1896_p5 }
 0x39d   : > { %p1899_p12 = pnand %p1898_p10, %p1892_p13 }
 0x39f   : > { %1902 = shalt.err (!%p1899_p12)
}
 0x3a0   : > { %s2446_s12 = smov 128   ;;  %s2447_s22 = smov 8   ;;  %v1467_v4 = vpop.permute.xlu0 %1466  ;;  %v1472_v10 = vpop.permute.xlu1 %1471 }
 0x3a1   : > { %s2459_s25 = scalar_lea.sflag [#allocation7], %s2218_s29  ;;  %s2461_s14 = sshll.u32 %s2081_s21, 8 }
 0x3a2   : > { %1746 = dma.vmem_to_hbm [thread:$0]  (%p2458_p9), %s2345_s24, 256, %s2343_s30, %s2459_s25, %s2446_s12, %s2446_s12, %s2447_s22  }
 0x3a3   : > { %s2460_s24 = sshll.u32 %s2218_s29, 4  ;;  %s2383_s16 = scalar_lea.hbm %s2439_s10, %s2461_s14 }
 0x3a4   : > { %s413_s30 = scalar_lea.vmem [#allocation5], %s2460_s24  ;;  %s1493_s25 = scalar_lea.sflag [#allocation4], %s2218_s29 }
 0x3a5   : > { %s1511_s13 = sshll.u32 %s413_s30, 4  ;;  %s1999_s12 = smov [#allocation5]   ;;  %s2376_s13 = int_to_ptr.vmem [resolvable:$true] %s1511_s13 }
 0x3a6   : > { %s1903_s24 = scalar_lea.vmem %s2376_s13, 256  ;;  %s1907_s22 = sshll.u32 %s1999_s12, 4  ;;  %s1908_s22 = int_to_ptr.vmem [resolvable:$false] %s1907_s22 }
 0x3a7   : > { %p1904_p2 = scmp.ne.s32.totalorder %s2376_s13, %s1903_s24  ;;  %s1909_s0 = scalar_lea.vmem %s1908_s22, 512 }
 0x3a8   : > { %p1910_p7 = scmp.lt.s32.totalorder %s2376_s13, %s1908_s22  ;;  %p1911_p8 = scmp.lt.s32.totalorder %s1909_s0, %s1903_s24 }
 0x3a9   : > { %p1905_p3 = pnand %p1904_p2, %p2458_p9 }
 0x3aa   : > { %p1912_p11 = por %p1911_p8, %p1910_p7 }
 0x3ab   : > { %p1906_p4 = pneg %p1905_p3 }
 0x3ad   : > { %p1913_p13 = pnand %p1912_p11, %p1906_p4 }
 0x424   : > { %v922_v0 = vpop.f32.mrb[16].mxu1 }
 0x425   : > { %v924_v46 = vpop.f32.mrb[17].mxu1 }
 0x426   : > { %v926_v62 = vpop.f32.mrb[18].mxu1 }
 0x427   : > { %v928_v63 = vpop.f32.mrb[19].mxu1 }
 0x466   : > { %v1449_v1 = vpop.f32.mrb[0].mxu0 }
 0x467   : > { %v1709_v2 = vadd.f32 %v1449_v1, %v922_v0  ;;  %v1451_v3 = vpop.f32.mrb[1].mxu0 }
 0x468   : > { %v1710_v5 = vadd.f32 %v1451_v3, %v924_v46  ;;  %v1453_v6 = vpop.f32.mrb[2].mxu0 }
 0x469   : > { %v1474_v7 = vadd.f32 %v1709_v2, %v1467_v4  ;;  %v1711_v8 = vadd.f32 %v1453_v6, %v926_v62  ;;  %v1455_v9 = vpop.f32.mrb[3].mxu0 }
 0x46a   : > { %v1475_v11 = vadd.f32 %v1710_v5, %v1467_v4  ;;  %v1712_v12 = vadd.f32 %v1455_v9, %v928_v63 }
 0x46b   : > { %v1476_v13 = vadd.f32 %v1711_v8, %v1472_v10 }
 0x46c   : > { %v1705_v14 = vpack.c.bf16 %v1475_v11, %v1474_v7  ;;  %v1477_v15 = vadd.f32 %v1712_v12, %v1472_v10 }
 0x46e   : > { %1490 = vst [vmem:[%s413_s30] sm:$0xff] %v1705_v14  ;;  %v1706_v16 = vpack.c.bf16 %v1477_v15, %v1476_v13 }
 0x470   : > { %1491 = vst [vmem:[%s413_s30 + $0x8] sm:$0xff] %v1706_v16 }
 0x471   : > { %1916 = shalt.err (!%p1913_p13)
}
 0x472   : > { %s1917_s21 = scalar_lea.hbm %s2383_s16, 256  ;;  %s1921_s12 = scalar_lea.hbm %s2439_s10, 512 }
 0x473   : > { %p1918_p1 = scmp.ne.s32.totalorder %s2383_s16, %s1917_s21  ;;  %p1922_p6 = scmp.lt.u32.totalorder %s2383_s16, %s2439_s10 }
 0x474   : > { %p1923_p10 = scmp.lt.u32.totalorder %s1921_s12, %s1917_s21  ;;  %p1925_p2 = scmp.lt.u32.totalorder %s1917_s21, %s2383_s16 }
 0x475   : > { %p1919_p0 = pnand %p1918_p1, %p2458_p9 }
 0x476   : > { %p1924_p12 = por %p1923_p10, %p1922_p6 }
 0x477   : > { %p1920_p5 = pneg %p1919_p0 }
 0x478   : > { %p1926_p3 = por %p1925_p2, %p1924_p12 }
 0x47a   : > { %p1927_p4 = pnand %p1926_p3, %p1920_p5 }
 0x47c   : > { %1930 = shalt.err (!%p1927_p4)
}
 0x47d   : > { %s2462_s0 = smov 8   ;;  %s2463_s15 = smov 128  }
 0x47e   : > { %1745 = dma.vmem_to_hbm [thread:$0]  (%p2458_p9), %s2376_s13, 256, %s2383_s16, %s1493_s25, %s2463_s15, %s2463_s15, %s2462_s0  }
 0x47f PF: > { %p1762_p7 = scmp.ge.s32.totalorder %s1973_s20, 2  ;;  %s1542_s24 = sand.u32 1, %s1961_s17  }
 0x480   : > { %p2464_p8 = scmp.ne.s32.totalorder %s2451_s28, 0  ;;  %s1543_s21 = scalar_lea.sflag [#allocation4], %s1542_s24 }
 0x482   : > { %p1754_p11 = pnand %p1762_p7, %p2464_p8 }
 0x484   : > { %1952 = dma.done.wait (!%p1754_p11), %s1543_s21, 256  }
 0x485   : > { %1954 = vsyncadd (!%p1754_p11), %s1543_s21, 4294967040  ;;  %s1552_s27 = scalar_lea.sflag [#allocation7], %s1542_s24 }
 0x486   : > { %1956 = dma.done.wait (!%p1754_p11), %s1552_s27, 256  }
 0x487   : > { %1958 = vsyncadd (!%p1754_p11), %s1552_s27, 4294967040  ;;  %s2465_s29 = sld [smem:[#allocation11_spill]]  ;;  %p26_p9 = scmp.ge.s32.totalorder %s2085_s23, 4  }
 0x488   : > { %s2466_s17 = smov %s1965_s18  ;;  %s2467_s18 = smov %s1969_s19 }
 0x489   : > { %s2469_s20 = smov %s2085_s23  ;;  %28 = sbr.rel (!%p26_p9) target bundleno = 8 (0x8), region = 120 }
 0x48d   : > { %s2468_s19 = smov %s2465_s29 }
 0x490   :  { %1557 = vsyncpa [#allocation3], 1 }
 0x491   :  { %1559 = vsyncpa [#allocation3 + $0x1], 1 }
 0x492   :  { %1560 = vsyncpa [#allocation4], 1 }
 0x493   :  { %1562 = vsyncpa [#allocation4 + $0x1], 1 }
 0x494   :  { %1563 = vsyncpa [#allocation7], 1 }
 0x495   :  { %1565 = vsyncpa [#allocation7 + $0x1], 1 }

</bundles_post_ra>
